<compile_context>
chip_gen: v7x
topology: tpu7x:2x2x1
jax: 0.10.0
libtpu: 0.0.40
codegen_flags: <defaults>
</compile_context>

<pallas_src>
import jax
import jax.numpy as jnp
from jax.experimental import pallas as pl
from jax.experimental.pallas import tpu as pltpu

_LANE = 128
_SUBLANE = 16                 # bf16 sublane packing; also a multiple of f32's 8
_TILE_B_MAX = 512
_RESIDENT_WEIGHT_BYTES = 24 * (1 << 20)   # above this, tile the hidden dim (v7x-safe)


def _cdiv(a, b):
    return -(-a // b)


def _round_up(n, m):
    return _cdiv(n, m) * m


def _pad_n(d):
    # Output/N-side (and fc2 K-side) dims: 256-align when large so the
    # v6e/v7x 2x256x256 MXU is filled; 128 (lane) alignment otherwise.
    return _round_up(d, 256) if d > _LANE else _round_up(d, _LANE)


def _pad2(a, shape, dtype):
    a = a.astype(dtype)
    if a.shape == tuple(shape):
        return a
    return jnp.zeros(shape, dtype).at[: a.shape[0], : a.shape[1]].set(a)


def _single_buffered_spec(block_shape, index_map):
    """BlockSpec for grid-invariant (resident) operands: single VMEM buffer."""
    try:
        return pl.BlockSpec(block_shape, index_map, pipeline_mode=pl.Buffered(1))
    except Exception:   # older jax without pipeline_mode / Buffered
        return pl.BlockSpec(block_shape, index_map)


def _resident_weight_buffers():
    try:
        pl.BlockSpec((8, 128), lambda i: (0, 0), pipeline_mode=pl.Buffered(1))
        return 1
    except Exception:
        return 2


_W_BUFS = _resident_weight_buffers()


def _vmem_limit(need_bytes):
    try:
        cap = int(pltpu.get_tpu_info().vmem_capacity_bytes) * 7 // 8
    except Exception:
        cap = 56 * (1 << 20)            # v7x-safe fallback (64 MiB/TC physical)
    cap = min(cap, 100 * (1 << 20))     # v5e/v6e cap
    return int(min(cap, max(32 * (1 << 20), int(need_bytes * 1.4))))


# ---------------------------------------------------------------------------
# Kernels
# ---------------------------------------------------------------------------

def _mlp_kernel_resident(x_ref, w1_ref, b1_ref, w2_ref, b2_ref, o_ref):
    # In-kernel bf16 cast of x (VPU work hidden under the MXU; avoids a
    # wrapper-side cast pass over x in HBM).
    xb = x_ref[...].astype(w1_ref.dtype)
    h = jnp.dot(xb, w1_ref[...], preferred_element_type=jnp.float32)
    h = jnp.maximum(h + b1_ref[...], 0.0)            # bias + ReLU in f32 (v5e-safe)
    out = jnp.dot(h.astype(w2_ref.dtype), w2_ref[...],
                  preferred_element_type=jnp.float32)
    o_ref[...] = (out + b2_ref[...]).astype(o_ref.dtype)


def _mlp_kernel_htiled(x_ref, w1_ref, b1_ref, w2_ref, b2_ref, o_ref, acc_ref):
    # Hidden dim streamed in slabs (grid axis 1, "arbitrary"); f32 accumulator
    # in VMEM scratch; bias2 + store only on the last slab.
    h_idx = pl.program_id(1)

    @pl.when(h_idx == 0)
    def _init():
        acc_ref[...] = jnp.zeros_like(acc_ref)

    xb = x_ref[...].astype(w1_ref.dtype)
    h = jnp.dot(xb, w1_ref[...], preferred_element_type=jnp.float32)
    h = jnp.maximum(h + b1_ref[...], 0.0)
    acc_ref[...] += jnp.dot(h.astype(w2_ref.dtype), w2_ref[...],
                            preferred_element_type=jnp.float32)

    @pl.when(h_idx == pl.num_programs(1) - 1)
    def _finalize():
        o_ref[...] = (acc_ref[...] + b2_ref[...]).astype(o_ref.dtype)


# ---------------------------------------------------------------------------
# Wrapper
# ---------------------------------------------------------------------------

def make_simple_nn(w1, b1, w2, b2, *, force_h_tiling=False, tile_h=None):
    """Prepare weights once (pad + bf16 cast) and return a fused forward fn.

    w1: (input_dim, hidden_dim), b1: (hidden_dim,),
    w2: (hidden_dim, output_dim), b2: (output_dim,)
    (weights are transposed vs. torch.nn.Linear.weight).
    """
    d_in, hidden = w1.shape
    hidden2, d_out = w2.shape
    assert hidden2 == hidden, "w1/w2 hidden dims mismatch"

    d_in_p = _round_up(d_in, _LANE)
    d_out_p = _pad_n(d_out)
    h_p0 = _pad_n(hidden)

    # Resident weights vs. hidden-tiled streaming (v7x-safe) decision.
    resident_bytes = 2 * (d_in_p * h_p0 + h_p0 * d_out_p)      # bf16
    use_h_tiling = force_h_tiling or (_W_BUFS * resident_bytes > _RESIDENT_WEIGHT_BYTES)

    if use_h_tiling:
        if tile_h is None:
            # Keep double-buffered bf16 w1/w2 slabs within ~12 MiB.
            budget = 12 * (1 << 20)
            t = budget // (4 * max(d_in_p + d_out_p, 1))
            tile_h = max(256, (t // 256) * 256)
        h_p = _round_up(max(hidden, 1), tile_h)
        tile_h = min(tile_h, h_p)
    else:
        h_p = h_p0
        tile_h = h_p
    num_ht = h_p // tile_h

    # One-time weight/bias preparation (cached in this closure): zero-padding
    # keeps the math exact; matmul operands become bf16, biases stay f32.
    w1p = _pad2(w1, (d_in_p, h_p), jnp.bfloat16)
    w2p = _pad2(w2, (h_p, d_out_p), jnp.bfloat16)
    b1p = _pad2(jnp.reshape(b1, (1, hidden)), (1, h_p), jnp.float32)
    b2p = _pad2(jnp.reshape(b2, (1, d_out)), (1, d_out_p), jnp.float32)

    def forward(x):
        orig_shape = x.shape
        if x.ndim != 2:
            x = x.reshape((-1, orig_shape[-1]))
        batch, d_in_x = x.shape
        assert d_in_x == d_in, "input feature dim mismatch"

        out_dtype = jnp.bfloat16 if x.dtype == jnp.bfloat16 else jnp.float32
        x_itemsize = jnp.dtype(x.dtype).itemsize
        o_itemsize = jnp.dtype(out_dtype).itemsize

        # --- batch tiling: minimize padding, keep double-buffered x/out tiles
        # small, and give v7x's second TensorCore work when batch allows. ---
        per_row = 2 * (d_in_p * x_itemsize + d_out_p * o_itemsize)
        cap = max(64, min(_TILE_B_MAX, (8 * (1 << 20)) // max(per_row, 1)))
        cap = max(_SUBLANE, (cap // _SUBLANE) * _SUBLANE)
        num_bt = max(1, _cdiv(batch, cap))
        if num_bt == 1 and batch >= 2 * _SUBLANE:
            num_bt = 2
        tile_b = _round_up(_cdiv(batch, num_bt), _SUBLANE)
        num_bt = _cdiv(batch, tile_b)
        b_p = num_bt * tile_b

        # Pad x only if needed; no dtype cast here (bf16 cast is in-kernel).
        if (b_p, d_in_p) != (batch, d_in):
            xp = jnp.zeros((b_p, d_in_p), x.dtype).at[:batch, :d_in].set(x)
        else:
            xp = x

        flops = 2 * b_p * (d_in_p * h_p + h_p * d_out_p)
        bytes_accessed = (xp.size * x_itemsize + w1p.size * 2 + w2p.size * 2
                          + b1p.size * 4 + b2p.size * 4 + b_p * d_out_p * o_itemsize)

        x_tile_bytes = 2 * tile_b * d_in_p * x_itemsize
        out_tile_bytes = 2 * tile_b * d_out_p * o_itemsize

        if not use_h_tiling:
            grid = (num_bt,)
            in_specs = [
                pl.BlockSpec((tile_b, d_in_p), lambda i: (i, 0)),
                _single_buffered_spec((d_in_p, h_p), lambda i: (0, 0)),
                _single_buffered_spec((1, h_p), lambda i: (0, 0)),
                _single_buffered_spec((h_p, d_out_p), lambda i: (0, 0)),
                _single_buffered_spec((1, d_out_p), lambda i: (0, 0)),
            ]
            out_specs = pl.BlockSpec((tile_b, d_out_p), lambda i: (i, 0))
            scratch_shapes = []
            kernel = _mlp_kernel_resident
            semantics = ("parallel",)
            vmem_need = (_W_BUFS * (w1p.size * 2 + w2p.size * 2
                                    + b1p.size * 4 + b2p.size * 4)
                         + x_tile_bytes + out_tile_bytes)
        else:
            grid = (num_bt, num_ht)
            in_specs = [
                pl.BlockSpec((tile_b, d_in_p), lambda i, h: (i, 0)),
                pl.BlockSpec((d_in_p, tile_h), lambda i, h: (0, h)),
                pl.BlockSpec((1, tile_h), lambda i, h: (0, h)),
                pl.BlockSpec((tile_h, d_out_p), lambda i, h: (h, 0)),
                _single_buffered_spec((1, d_out_p), lambda i, h: (0, 0)),
            ]
            out_specs = pl.BlockSpec((tile_b, d_out_p), lambda i, h: (i, 0))
            scratch_shapes = [pltpu.VMEM((tile_b, d_out_p), jnp.float32)]
            kernel = _mlp_kernel_htiled
            semantics = ("parallel", "arbitrary")
            vmem_need = (2 * 2 * (d_in_p * tile_h + tile_h * d_out_p)   # bf16 slabs, 2 bufs
                         + 2 * 4 * tile_h + _W_BUFS * 4 * d_out_p       # biases
                         + x_tile_bytes + out_tile_bytes
                         + 4 * tile_b * d_out_p)                        # f32 accumulator

        out_padded = pl.pallas_call(
            kernel,
            out_shape=jax.ShapeDtypeStruct((b_p, d_out_p), out_dtype),
            grid_spec=pltpu.PrefetchScalarGridSpec(
                num_scalar_prefetch=0,
                grid=grid,
                in_specs=in_specs,
                out_specs=out_specs,
                scratch_shapes=scratch_shapes),
            compiler_params=pltpu.CompilerParams(
                dimension_semantics=semantics,
                vmem_limit_bytes=_vmem_limit(vmem_need)),
            cost_estimate=pl.CostEstimate(
                flops=flops, bytes_accessed=bytes_accessed, transcendentals=0),
        )(xp, w1p, b1p, w2p, b2p)

        out = out_padded[:batch, :d_out].astype(x.dtype)
        if len(orig_shape) != 2:
            out = out.reshape(orig_shape[:-1] + (d_out,))
        return out

    return forward


def simple_nn_forward(x, w1, b1, w2, b2, **kwargs):
    """One-shot convenience wrapper (prefer make_simple_nn for repeated calls)."""
    return make_simple_nn(w1, b1, w2, b2, **kwargs)(x)


# ---------------------------------------------------------------------------
# References & demo
# ---------------------------------------------------------------------------

def _reference_f32(x, w1, b1, w2, b2):
    h = jnp.maximum(x @ w1 + b1[None, :], 0.0)
    return h @ w2 + b2[None, :]


def _reference_bf16(x, w1, b1, w2, b2):
    xb = x.astype(jnp.bfloat16)
    h = jnp.dot(xb, w1.astype(jnp.bfloat16),
                preferred_element_type=jnp.float32) + b1[None, :]
    h = jnp.maximum(h, 0.0)
    return jnp.dot(h.astype(jnp.bfloat16), w2.astype(jnp.bfloat16),
                   preferred_element_type=jnp.float32) + b2[None, :]


if __name__ == "__main__":
    def _init_params(key, d_in, hidden, d_out):
        kw1, kb1, kw2, kb2 = jax.random.split(key, 4)
        lim1 = 1.0 / float(d_in) ** 0.5
        lim2 = 1.0 / float(hidden) ** 0.5
        w1 = jax.random.uniform(kw1, (d_in, hidden), jnp.float32, -lim1, lim1)
        b1 = jax.random.uniform(kb1, (hidden,), jnp.float32, -lim1, lim1)
        w2 = jax.random.uniform(kw2, (hidden, d_out), jnp.float32, -lim2, lim2)
        b2 = jax.random.uniform(kb2, (d_out,), jnp.float32, -lim2, lim2)
        return w1, b1, w2, b2

    root = jax.random.PRNGKey(0)
    k_small, k_big = jax.random.split(root)

    # 1) Small shapes consistent with SimpleNN(input_dim, hidden_dim, output_dim):
    #    resident-weights path.
    batch, d_in, hidden, d_out = 8, 32, 64, 16
    kx, kp = jax.random.split(k_small)
    x = jax.random.normal(kx, (batch, d_in), dtype=jnp.float32)
    w1, b1, w2, b2 = _init_params(kp, d_in, hidden, d_out)
    fwd = make_simple_nn(w1, b1, w2, b2)              # weights prepared once here
    out = jax.block_until_ready(fwd(x))
    assert out.shape == (batch, d_out)
    assert jnp.allclose(out, _reference_bf16(x, w1, b1, w2, b2), atol=2e-3, rtol=2e-2)
    assert jnp.allclose(out, _reference_f32(x, w1, b1, w2, b2), atol=3e-2, rtol=3e-2)

    # 2) Hidden-tiled fallback path (forced at small scale for coverage of the
    #    large-weight / v7x regime), with a split batch grid (2 tiles).
    batch2, d_in2, hidden2, d_out2 = 40, 64, 512, 32
    kx2, kp2 = jax.random.split(k_big)
    x2 = jax.random.normal(kx2, (batch2, d_in2), dtype=jnp.float32)
    p2 = _init_params(kp2, d_in2, hidden2, d_out2)
    fwd2 = make_simple_nn(*p2, force_h_tiling=True, tile_h=256)
    out2 = jax.block_until_ready(fwd2(x2))
    assert out2.shape == (batch2, d_out2)
    assert jnp.allclose(out2, _reference_bf16(x2, *p2), atol=5e-3, rtol=5e-2)

    print("KERNEL_OK")
</pallas_src>

<mosaic_0001>
module attributes {stable_mosaic.version = 11 : i64} {
  func.func @_mlp_kernel_resident(%arg0: i32, %arg1: memref<16x128xf32, #tpu.memory_space<vmem>>, %arg2: memref<128x128xbf16, #tpu.memory_space<vmem>>, %arg3: memref<1x128xf32, #tpu.memory_space<vmem>>, %arg4: memref<128x128xbf16, #tpu.memory_space<vmem>>, %arg5: memref<1x128xf32, #tpu.memory_space<vmem>>, %arg6: memref<16x128xf32, #tpu.memory_space<vmem>>) attributes {dimension_semantics = [#tpu.dimension_semantics<parallel>], iteration_bounds = array<i64: 1>, scalar_prefetch = 0 : i64, scratch_operands = 0 : i64, tpu.core_type = #tpu.core_type<tc>, window_params = [{transform_indices = @transform_0, window_bounds = array<i64: 16, 128>}, {pipeline_mode = #tpu.pipeline_mode<synchronous>, transform_indices = @transform_1, window_bounds = array<i64: 128, 128>}, {pipeline_mode = #tpu.pipeline_mode<synchronous>, transform_indices = @transform_2, window_bounds = array<i64: 1, 128>}, {pipeline_mode = #tpu.pipeline_mode<synchronous>, transform_indices = @transform_3, window_bounds = array<i64: 128, 128>}, {pipeline_mode = #tpu.pipeline_mode<synchronous>, transform_indices = @transform_4, window_bounds = array<i64: 1, 128>}, {transform_indices = @transform_5, window_bounds = array<i64: 16, 128>}]} {
    %c0 = arith.constant 0 : index
    %c0_0 = arith.constant 0 : index
    %0 = vector.load %arg1[%c0, %c0_0] : memref<16x128xf32, #tpu.memory_space<vmem>>, vector<16x128xf32>
    %1 = arith.truncf %0 : vector<16x128xf32> to vector<16x128xbf16>
    %c0_1 = arith.constant 0 : index
    %c0_2 = arith.constant 0 : index
    %2 = vector.load %arg2[%c0_1, %c0_2] : memref<128x128xbf16, #tpu.memory_space<vmem>>, vector<128x128xbf16>
    %cst = arith.constant dense<0.000000e+00> : vector<16x128xf32>
    %3 = tpu.matmul %1, %2, %cst {dimension_numbers = #tpu.dot_dimension_numbers<[1], [0], [0], [1], [0, 0, 1, 1], [], []>} : vector<16x128xbf16>, vector<128x128xbf16>, vector<16x128xf32> -> vector<16x128xf32>
    %c0_3 = arith.constant 0 : index
    %c0_4 = arith.constant 0 : index
    %4 = vector.load %arg3[%c0_3, %c0_4] : memref<1x128xf32, #tpu.memory_space<vmem>>, vector<1x128xf32>
    %5 = vector.broadcast %4 : vector<1x128xf32> to vector<16x128xf32>
    %6 = arith.addf %3, %5 : vector<16x128xf32>
    %cst_5 = arith.constant 0.000000e+00 : f32
    %7 = vector.broadcast %cst_5 : f32 to vector<16x128xf32>
    %8 = arith.maximumf %6, %7 : vector<16x128xf32>
    %9 = arith.truncf %8 : vector<16x128xf32> to vector<16x128xbf16>
    %c0_6 = arith.constant 0 : index
    %c0_7 = arith.constant 0 : index
    %10 = vector.load %arg4[%c0_6, %c0_7] : memref<128x128xbf16, #tpu.memory_space<vmem>>, vector<128x128xbf16>
    %cst_8 = arith.constant dense<0.000000e+00> : vector<16x128xf32>
    %11 = tpu.matmul %9, %10, %cst_8 {dimension_numbers = #tpu.dot_dimension_numbers<[1], [0], [0], [1], [0, 0, 1, 1], [], []>} : vector<16x128xbf16>, vector<128x128xbf16>, vector<16x128xf32> -> vector<16x128xf32>
    %c0_9 = arith.constant 0 : index
    %c0_10 = arith.constant 0 : index
    %12 = vector.load %arg5[%c0_9, %c0_10] : memref<1x128xf32, #tpu.memory_space<vmem>>, vector<1x128xf32>
    %13 = vector.broadcast %12 : vector<1x128xf32> to vector<16x128xf32>
    %14 = arith.addf %11, %13 : vector<16x128xf32>
    %c0_11 = arith.constant 0 : index
    %c0_12 = arith.constant 0 : index
    %15 = vector.load %arg6[%c0_11, %c0_12] : memref<16x128xf32, #tpu.memory_space<vmem>>, vector<16x128xf32>
    tpu.vector_store %arg6[%c0_11, %c0_12], %14 {strides = array<i32>} : memref<16x128xf32, #tpu.memory_space<vmem>>, vector<16x128xf32>,
    return
  }
  func.func @transform_0(%arg0: i32) -> (i32, i32) {
    %c0_i32 = arith.constant 0 : i32
    %c0_i32_0 = arith.constant 0 : i32
    return %arg0, %c0_i32 : i32, i32
  }
  func.func @transform_1(%arg0: i32) -> (i32, i32) {
    %c0_i32 = arith.constant 0 : i32
    %c0_i32_0 = arith.constant 0 : i32
    %c0_i32_1 = arith.constant 0 : i32
    return %c0_i32, %c0_i32_0 : i32, i32
  }
  func.func @transform_2(%arg0: i32) -> (i32, i32) {
    %c0_i32 = arith.constant 0 : i32
    %c0_i32_0 = arith.constant 0 : i32
    %c0_i32_1 = arith.constant 0 : i32
    return %c0_i32, %c0_i32_0 : i32, i32
  }
  func.func @transform_3(%arg0: i32) -> (i32, i32) {
    %c0_i32 = arith.constant 0 : i32
    %c0_i32_0 = arith.constant 0 : i32
    %c0_i32_1 = arith.constant 0 : i32
    return %c0_i32, %c0_i32_0 : i32, i32
  }
  func.func @transform_4(%arg0: i32) -> (i32, i32) {
    %c0_i32 = arith.constant 0 : i32
    %c0_i32_0 = arith.constant 0 : i32
    %c0_i32_1 = arith.constant 0 : i32
    return %c0_i32, %c0_i32_0 : i32, i32
  }
  func.func @transform_5(%arg0: i32) -> (i32, i32) {
    %c0_i32 = arith.constant 0 : i32
    %c0_i32_0 = arith.constant 0 : i32
    return %arg0, %c0_i32 : i32, i32
  }
}

</mosaic_0001>

<bundles_post_ra>
// kernel: tpu_custom_call.1
= control target key start
LH: loop header
LB: loop body
LE: loop exit
PB: predicated region body
PF: predicated region fallthrough
CT: control target
= control target key end

     0   :  { %10 = vsyncpa [#allocation3], 0  ;;  %s615_s0 = inlined_call_operand.hbm [shape: f32[16,128], index: 0, kind: input, shape index: {}]   ;;  %s616_s1 = inlined_call_operand.hbm [shape: bf16[128,128], index: 1, kind: input, shape index: {}]   ;;  %s617_s2 = inlined_call_operand.vmem [shape: f32[1,128], index: 2, kind: input, shape index: {}]   ;;  %s618_s3 = inlined_call_operand.hbm [shape: bf16[128,128], index: 3, kind: input, shape index: {}]   ;;  %s619_s4 = inlined_call_operand.vmem [shape: f32[1,128], index: 4, kind: input, shape index: {}]   ;;  %s620_s5 = inlined_call_operand.hbm [shape: f32[16,128], index: 5, kind: output, shape index: {}]  }
   0x1   :  { %11 = vsyncpa [#allocation6], 0 }
   0x2   :  { %12 = vsyncpa [#allocation4], 0  ;;  %s509_s18 = smov [#allocation5]   ;;  %s415_s22 = scalar_lea.hbm %s616_s1, 1024 }
   0x3   :  { %s30_s19 = sshll.u32 %s509_s18, 4  ;;  %p416_p0 = scmp.ne.s32.totalorder %s616_s1, %s415_s22  ;;  %s31_s19 = int_to_ptr.vmem [resolvable:$true] %s30_s19 }
   0x4   :  { %p419_p1 = scmp.lt.u32.totalorder %s415_s22, %s616_s1 }
   0x6   :  { %p421_p2 = pnand %p419_p1, %p416_p0 }
   0x8   :  { %424 = shalt.err (!%p421_p2)
}
   0x9   :  { %s425_s27 = scalar_lea.vmem %s31_s19, 1024  ;;  %p430_p4 = scmp.lt.s32.totalorder %s31_s19, %s31_s19 }
   0xa   :  { %p426_p3 = scmp.ne.s32.totalorder %s31_s19, %s425_s27  ;;  %p431_p5 = scmp.lt.s32.totalorder %s425_s27, %s425_s27 }
   0xc   :  { %p432_p6 = por %p431_p5, %p430_p4 }
   0xe   :  { %p433_p7 = pnand %p432_p6, %p426_p3 }
  0x10   :  { %436 = shalt.err (!%p433_p7)
}
  0x11   :  { %s510_s28 = smov 64   ;;  %s511_s29 = smov 4  }
  0x12   :  { %36 = dma.hbm_to_vmem [thread:$0]  %s616_s1, 1024, %s31_s19, [#allocation6], %s510_s28, %s510_s28, %s511_s29  }
  0x13   :  { %s512_s7 = smov [#allocation2]   ;;  %s437_s11 = scalar_lea.hbm %s615_s0, 256 }
  0x14   :  { %s18_s8 = sshll.u32 %s512_s7, 4  ;;  %p438_p8 = scmp.ne.s32.totalorder %s615_s0, %s437_s11  ;;  %s19_s8 = int_to_ptr.vmem [resolvable:$true] %s18_s8 }
  0x15   :  { %p441_p9 = scmp.lt.u32.totalorder %s437_s11, %s615_s0 }
  0x17   :  { %p443_p10 = pnand %p441_p9, %p438_p8 }
  0x19   :  { %446 = shalt.err (!%p443_p10)
}
  0x1a   :  { %s447_s16 = scalar_lea.vmem %s19_s8, 256  ;;  %p452_p12 = scmp.lt.s32.totalorder %s19_s8, %s19_s8 }
  0x1b   :  { %p448_p11 = scmp.ne.s32.totalorder %s19_s8, %s447_s16  ;;  %p453_p13 = scmp.lt.s32.totalorder %s447_s16, %s447_s16 }
  0x1d   :  { %p454_p0 = por %p453_p13, %p452_p12 }
  0x1f   :  { %p455_p1 = pnand %p454_p0, %p448_p11 }
  0x21   :  { %458 = shalt.err (!%p455_p1)
}
  0x22   :  { %s513_s1 = smov 128   ;;  %s514_s17 = smov 8  }
  0x23   :  { %24 = dma.hbm_to_vmem [thread:$0]  %s615_s0, 256, %s19_s8, [#allocation3], %s513_s1, %s513_s1, %s514_s17  }
  0x24   :  { %s515_s20 = smov [#allocation7]   ;;  %s459_s24 = scalar_lea.hbm %s618_s3, 1024 }
  0x25   :  { %s44_s21 = sshll.u32 %s515_s20, 4  ;;  %p460_p2 = scmp.ne.s32.totalorder %s618_s3, %s459_s24  ;;  %s45_s21 = int_to_ptr.vmem [resolvable:$true] %s44_s21 }
  0x26   :  { %p463_p3 = scmp.lt.u32.totalorder %s459_s24, %s618_s3 }
  0x28   :  { %p465_p4 = pnand %p463_p3, %p460_p2 }
  0x2a   :  { %468 = shalt.err (!%p465_p4)
}
  0x2b   :  { %s469_s6 = scalar_lea.vmem %s45_s21, 1024  ;;  %p474_p6 = scmp.lt.s32.totalorder %s45_s21, %s45_s21 }
  0x2c   :  { %p470_p5 = scmp.ne.s32.totalorder %s45_s21, %s469_s6  ;;  %p475_p7 = scmp.lt.s32.totalorder %s469_s6, %s469_s6 }
  0x2e   :  { %p476_p8 = por %p475_p7, %p474_p6 }
  0x30   :  { %p477_p9 = pnand %p476_p8, %p470_p5 }
  0x32   :  { %480 = shalt.err (!%p477_p9)
}
  0x33   :  { %50 = dma.hbm_to_vmem [thread:$0]  %s618_s3, 1024, %s45_s21, [#allocation6], %s510_s28, %s510_s28, %s511_s29  }
  0x34   :  { %503 = dma.done.wait [#allocation3], 256  }
  0x35   :  { %504 = vsyncadd [#allocation3], 4294967040 }
  0x36   :  { %505 = dma.done.wait [#allocation6], 2048  }
  0x37   :  { %506 = vsyncadd [#allocation6], 4294965248  ;;  %v516_v0 = vmov 0.0   ;;  %vm517_vm0 = vmmov 0   ;;  %v399_v1 = vld [vmem:[#allocation5] sm:$0xff]   ;;  %v400_v2 = vld [vmem:[#allocation5 + $0x8] sm:$0xff]  }
  0x38   :  { %349 = vmatprep.subr.bf16.mxu0 %v516_v0  ;;  %365 = vmatprep.mubr.msk.bf16.mxu0 %vm517_vm0, %v516_v0  ;;  %v401_v3 = vld [vmem:[#allocation5 + $0x10] sm:$0xff]   ;;  %v407_v4 = vld [vmem:[#allocation7] sm:$0xff]   ;;  %v402_v5 = vld [vmem:[#allocation5 + $0x18] sm:$0xff]   ;;  %s518_s9 = smov [#allocation8]  }
  0x39   :  { %369 = vmatprep.subr.bf16.mxu1 %v516_v0  ;;  %385 = vmatprep.mubr.msk.bf16.mxu1 %vm517_vm0, %v516_v0  ;;  %v408_v6 = vld [vmem:[#allocation7 + $0x8] sm:$0xff]   ;;  %v403_v7 = vld [vmem:[#allocation5 + $0x20] sm:$0xff]   ;;  %v409_v8 = vld [vmem:[#allocation7 + $0x10] sm:$0xff]   ;;  %s300_s10 = sshll.u32 %s518_s9, 4  ;;  %s301_s10 = int_to_ptr.vmem [resolvable:$true] %s300_s10 }
  0x3a   :  { %350 = vmatpush3.bf16.msra.mxu0 %v399_v1  ;;  %370 = vmatpush3.bf16.msra.mxu1 %v407_v4  ;;  %v404_v9 = vld [vmem:[#allocation5 + $0x28] sm:$0xff]   ;;  %v410_v10 = vld [vmem:[#allocation7 + $0x18] sm:$0xff]   ;;  %v405_v11 = vld [vmem:[#allocation5 + $0x30] sm:$0xff]   ;;  %p486_p11 = scmp.lt.s32.totalorder %s301_s10, %s301_s10 }
  0x3b   :  { %351 = vmatprep.subr.bf16.mxu0 %v516_v0  ;;  %371 = vmatprep.subr.bf16.mxu1 %v516_v0  ;;  %v411_v12 = vld [vmem:[#allocation7 + $0x20] sm:$0xff]   ;;  %v406_v13 = vld [vmem:[#allocation5 + $0x38] sm:$0xff]   ;;  %v63_v14 = vld [vmem:[#allocation2] sm:$0xff] }
  0x3c   :  { %v64_v15 = vld [vmem:[#allocation2 + $0x8] sm:$0xff]  ;;  %v412_v16 = vld [vmem:[#allocation7 + $0x28] sm:$0xff]   ;;  %v413_v18 = vld [vmem:[#allocation7 + $0x30] sm:$0xff]  }
  0x3d   :  { %v65_v17 = vpack.c.bf16 %v64_v15, %v63_v14  ;;  %v414_v19 = vld [vmem:[#allocation7 + $0x38] sm:$0xff]   ;;  %v313_v20 = vld [vmem:[%s617_s2] ss:$0 sm:$0xff]  ;;  %s481_s2 = scalar_lea.vmem %s301_s10, 256 }
  0x3e   :  { %352 = vmatpush3.bf16.msra.mxu0 %v400_v2  ;;  %372 = vmatpush3.bf16.msra.mxu1 %v408_v6  ;;  %v322_v30 = vld [vmem:[%s619_s4] ss:$0 sm:$0xff]  ;;  %p482_p10 = scmp.ne.s32.totalorder %s301_s10, %s481_s2  ;;  %p487_p12 = scmp.lt.s32.totalorder %s481_s2, %s481_s2 }
  0x3f   :  { %353 = vmatprep.subr.bf16.mxu0 %v516_v0  ;;  %373 = vmatprep.subr.bf16.mxu1 %v516_v0 }
  0x40   :  { %p488_p13 = por %p487_p12, %p486_p11 }
  0x42   :  { %354 = vmatpush3.bf16.msra.mxu0 %v401_v3  ;;  %374 = vmatpush3.bf16.msra.mxu1 %v409_v8  ;;  %p489_p0 = pnand %p488_p13, %p482_p10 }
  0x43   :  { %355 = vmatprep.subr.bf16.mxu0 %v516_v0  ;;  %375 = vmatprep.subr.bf16.mxu1 %v516_v0 }
  0x46   :  { %356 = vmatpush3.bf16.msra.mxu0 %v402_v5  ;;  %376 = vmatpush3.bf16.msra.mxu1 %v410_v10 }
  0x47   :  { %357 = vmatprep.subr.bf16.mxu0 %v516_v0  ;;  %377 = vmatprep.subr.bf16.mxu1 %v516_v0 }
  0x4a   :  { %358 = vmatpush3.bf16.msra.mxu0 %v403_v7  ;;  %378 = vmatpush3.bf16.msra.mxu1 %v411_v12 }
  0x4b   :  { %359 = vmatprep.subr.bf16.mxu0 %v516_v0  ;;  %379 = vmatprep.subr.bf16.mxu1 %v516_v0 }
  0x4e   :  { %360 = vmatpush3.bf16.msra.mxu0 %v404_v9  ;;  %380 = vmatpush3.bf16.msra.mxu1 %v412_v16 }
  0x4f   :  { %361 = vmatprep.subr.bf16.mxu0 %v516_v0  ;;  %381 = vmatprep.subr.bf16.mxu1 %v516_v0 }
  0x52   :  { %362 = vmatpush3.bf16.msra.mxu0 %v405_v11  ;;  %382 = vmatpush3.bf16.msra.mxu1 %v413_v18 }
  0x53   :  { %363 = vmatprep.subr.bf16.mxu0 %v516_v0  ;;  %383 = vmatprep.subr.bf16.mxu1 %v516_v0 }
  0x56   :  { %364 = vmatpush3.bf16.msra.mxu0 %v406_v13  ;;  %384 = vmatpush3.bf16.msra.mxu1 %v414_v19 }
  0x59   :  { %366 = vmatmul.mubr.bf16.vlgmr.msra.gmra.mrb[0].mxu0 %v65_v17 }
 0x12c   :  { %v171_v21 = vpop.f32.mrb[0].mxu0 }
 0x12d   :  { %v172_v22 = vadd.f32 %v313_v20, %v171_v21  ;;  %v367_v23 = vpop.f32.mrb[1].mxu0 }
 0x12e   :  { %v174_v24 = vpop.f32.mrb[2].mxu0 }
 0x12f   :  { %v175_v25 = vadd.f32 %v313_v20, %v174_v24  ;;  %v368_v26 = vpop.f32.mrb[3].mxu0  ;;  %v178_v27 = vmax.f32 %v172_v22, 0.0 }
 0x131   :  { %v179_v28 = vmax.f32 %v175_v25, 0.0 }
 0x133   :  { %v180_v29 = vpack.c.bf16 %v179_v28, %v178_v27 }
 0x135   :  { %386 = vmatmul.mubr.bf16.vlgmr.msra.gmra.mrb[0].mxu1 %v180_v29 }
 0x208   :  { %v286_v31 = vpop.f32.mrb[0].mxu1 }
 0x209   :  { %v287_v32 = vadd.f32 %v322_v30, %v286_v31  ;;  %v387_v33 = vpop.f32.mrb[1].mxu1 }
 0x20a   :  { %v289_v34 = vpop.f32.mrb[2].mxu1 }
 0x20b   :  { %293 = vst [vmem:[#allocation8] sm:$0xff] %v287_v32  ;;  %v290_v35 = vadd.f32 %v322_v30, %v289_v34  ;;  %v388_v36 = vpop.f32.mrb[3].mxu1 }
 0x20d   :  { %294 = vst [vmem:[#allocation8 + $0x8] sm:$0xff] %v290_v35 }
 0x20e   :  { %492 = shalt.err (!%p489_p0)
}
 0x20f   :  { %s493_s12 = scalar_lea.hbm %s620_s5, 256 }
 0x210   :  { %p494_p1 = scmp.ne.s32.totalorder %s620_s5, %s493_s12  ;;  %p497_p2 = scmp.lt.u32.totalorder %s493_s12, %s620_s5 }
 0x212   :  { %p499_p3 = pnand %p497_p2, %p494_p1 }
 0x214   :  { %502 = shalt.err (!%p499_p3)
}
 0x215   :  { %306 = dma.vmem_to_hbm [thread:$0]  %s301_s10, 256, %s620_s5, [#allocation4], %s513_s1, %s513_s1, %s514_s17  }
 0x216   :  { %507 = dma.done.wait [#allocation4], 256  }
 0x217   :  { %508 = vsyncadd [#allocation4], 4294967040 }
 0x218   :  { %310 = vsyncpa [#allocation3], 1 }
 0x219   :  { %311 = vsyncpa [#allocation6], 1 }
 0x21a   :  { %312 = vsyncpa [#allocation4], 1 }

</bundles_post_ra>
